<compile_context>
chip_gen: v7x
topology: tpu7x:2x2x1
jax: 0.10.0
libtpu: 0.0.40
codegen_flags: <defaults>
</compile_context>

<pallas_src>
import jax
import jax.numpy as jnp
from jax.experimental import pallas as pl
from jax.experimental.pallas import tpu as pltpu


def _fused_up_conv_kernel(w_ref, b_ref, keep_ref, x_ref, halo_ref, o_ref, xs_ref):
    """One (batch, row-tile) grid step.

    w_ref:    (4*Cout, 4*Cin_pad)  stacked conv weights; row block = sub-pixel slab
              (2a+b), column block = shifted-operand slot, zeros in K-padding cols
    b_ref:    (4*Cout, 1)          bias, tiled once per (a, b) slab
    keep_ref: (1, Lt)              1.0 except at the image's last column (0.0)
    x_ref:    (1, Cin, Lt)         flattened input rows of this tile (Lt = tile_h*W)
    halo_ref: (1, 1, Cin, W)       input row just below this tile (zeros at image end)
    o_ref:    (1, 4*Cout, Lt)      four sub-pixel output slabs, stacked along channels
    xs_ref:   (4*Cin_pad, Lt)      packed MXU operand (sublane-aligned slots)
    """
    cin = x_ref.shape[1]
    lt = x_ref.shape[2]
    w_img = halo_ref.shape[3]
    cin_pad = xs_ref.shape[0] // 4

    x00 = x_ref[0]                            # x[i, j]
    keep = keep_ref[...] > 0.5                # boolean select (NaN/Inf-safe), bcast over Cin
    halo = halo_ref[0, 0]                     # (Cin, W) = x[i_last + 1, :] (or zeros)

    # Zero the K-padding rows (scratch is uninitialized; the matching weight columns
    # are zero, but 0 * NaN garbage would still poison the matmul).  Cheap / usually
    # skipped entirely because realistic Cin is a multiple of 8.
    if cin_pad != cin:
        pad = jnp.zeros((cin_pad - cin, lt), xs_ref.dtype)
        for s in range(4):
            xs_ref[s * cin_pad + cin:(s + 1) * cin_pad, :] = pad

    # Shifted operands, built entirely in vregs (lane rolls + boolean selects); the
    # only cross-tile data (the halo row) is patched into the packed operand with two
    # tiny lane-masked stores.
    x01 = jnp.where(keep, pltpu.roll(x00, shift=lt - 1, axis=1), 0.0)      # x[i, j+1]
    x10 = pltpu.roll(x00, shift=lt - w_img, axis=1)                        # x[i+1, j]   (last row patched below)
    x11 = jnp.where(keep, pltpu.roll(x10, shift=lt - 1, axis=1), 0.0)      # x[i+1, j+1] (last row patched below)

    xs_ref[0:cin, :] = x00
    xs_ref[cin_pad:cin_pad + cin, :] = x01
    xs_ref[2 * cin_pad:2 * cin_pad + cin, :] = x10
    xs_ref[2 * cin_pad:2 * cin_pad + cin, lt - w_img:] = halo
    xs_ref[3 * cin_pad:3 * cin_pad + cin, :] = x11
    if w_img > 1:
        xs_ref[3 * cin_pad:3 * cin_pad + cin, lt - w_img:lt - 1] = halo[:, 1:]
    # (lane lt-1 is the tile's bottom-right corner, j == W-1: already zeroed via `keep`)

    # One K-stacked MXU matmul produces all four sub-pixel slabs at once.
    acc = jnp.dot(w_ref[...], xs_ref[...], preferred_element_type=jnp.float32)
    o_ref[0] = (acc + b_ref[...]).astype(o_ref.dtype)


def _vmem_capacity_bytes():
    """Physical VMEM of the current TPU generation (conservative fallback)."""
    try:
        info = pltpu.get_tpu_info()
        cap = getattr(info, "vmem_capacity_bytes", None)
        if cap:
            return int(cap)
    except Exception:
        pass
    return 64 * 1024 * 1024        # v7x-sized fallback: safe on every generation


def _choose_tile_h(H, W, Cin, Cout, n_batch, budget_bytes):
    """Largest row-tile height th such that th divides H, th*W is a multiple of
    128 (lane-dense, unmasked stores) and the per-step footprint fits the
    generation-aware VMEM budget.  When batch == 1, prefer >= 2 row tiles so
    dual-TensorCore parts still get parallel work."""
    cin_pad = ((Cin + 7) // 8) * 8

    def step_bytes(th):
        lt = th * W
        x_io = 2 * Cin * lt           # double-buffered input block
        out_io = 2 * 4 * Cout * lt    # double-buffered output block
        scr = 4 * cin_pad * lt        # packed operand scratch
        regs = 4 * Cin * lt           # live shifted operands / temporaries
        return 4 * (x_io + out_io + scr + regs)

    cands = [th for th in range(1, H + 1) if H % th == 0 and (th * W) % 128 == 0]
    if not cands:
        return H                      # block == full array is always legal
    fits = [th for th in cands if step_bytes(th) <= budget_bytes]
    if not fits:
        return min(cands)             # TODO(synk): add column tiling for extremely wide images
    if n_batch == 1:
        multi = [th for th in fits if th < H]
        if multi:
            return max(multi)
    return max(fits)


def upsampling_forward(x, weight, bias):
    """Forward pass of the PyTorch `Upsampling` module.

    x:      (N, Cin, H, W)     float32
    weight: (Cout, Cin, 2, 2)  float32 (torch OIHW)
    bias:   (Cout,)            float32
    returns (N, Cout, 2H, 2W)  float32
    """
    N, Cin, H, W = x.shape
    Cout = weight.shape[0]
    L0 = H * W
    cin_pad = ((Cin + 7) // 8) * 8
    f32 = jnp.float32

    vmem_cap = _vmem_capacity_bytes()
    budget = vmem_cap // 5            # ~25 MiB on v5e/v6e (128 MiB), ~12 MiB on v7x (64 MiB)
    vmem_limit = vmem_cap // 2        # ~64 MiB on v5e/v6e, 32 MiB on v7x

    tile_h = _choose_tile_h(H, W, Cin, Cout, N, budget)
    n_tiles = H // tile_h
    Lt = tile_h * W

    x_flat = x.reshape(N, Cin, L0)    # free reshape (contiguous)

    # Halo: input row just below each tile (zeros below the image's last row).
    # TODO(synk): fetch this row in-kernel (Element-indexed BlockSpec on x) to drop the
    # tiny wrapper gather and the per-step sub-128-lane (Cin, W) DMA.
    if n_tiles > 1:
        nxt = jnp.swapaxes(x[:, :, tile_h::tile_h, :], 1, 2)      # (N, nT-1, Cin, W)
        halo = jnp.concatenate([nxt, jnp.zeros((N, 1, Cin, W), x.dtype)], axis=1)
    else:
        halo = jnp.zeros((N, 1, Cin, W), x.dtype)

    # "keep" mask for the right-neighbour shifts: 1.0 except at the image's last column.
    # Periodic with period W and Lt % W == 0, so one tile's worth is resident for the
    # whole grid (constant block index -> loaded once).
    keep = ((jnp.arange(Lt, dtype=jnp.int32) % W) != (W - 1)).astype(x.dtype).reshape(1, Lt)

    # Stacked weight matrix (4*Cout, 4*Cin_pad): row block 2a+b (output sub-pixel),
    # column block s in {x00, x01, x10, x11}; taps whose shifted operand coincides are
    # pre-summed in f32; K-padding columns stay zero.
    w00 = weight[:, :, 0, 0].astype(f32)
    w01 = weight[:, :, 0, 1].astype(f32)
    w10 = weight[:, :, 1, 0].astype(f32)
    w11 = weight[:, :, 1, 1].astype(f32)
    w_stack = jnp.zeros((4 * Cout, 4 * cin_pad), f32)

    def put(ws, slab, slot, mat):
        return ws.at[slab * Cout:(slab + 1) * Cout,
                     slot * cin_pad:slot * cin_pad + Cin].set(mat)

    w_stack = put(w_stack, 0, 0, w00 + w01 + w10 + w11)   # output (2i,   2j)
    w_stack = put(w_stack, 1, 0, w00 + w10)               # output (2i,   2j+1)
    w_stack = put(w_stack, 1, 1, w01 + w11)
    w_stack = put(w_stack, 2, 0, w00 + w01)               # output (2i+1, 2j)
    w_stack = put(w_stack, 2, 2, w10 + w11)
    w_stack = put(w_stack, 3, 0, w00)                     # output (2i+1, 2j+1)
    w_stack = put(w_stack, 3, 1, w01)
    w_stack = put(w_stack, 3, 2, w10)
    w_stack = put(w_stack, 3, 3, w11)
    b4 = jnp.tile(bias.astype(f32), 4).reshape(4 * Cout, 1)

    cost = pl.CostEstimate(
        flops=2 * (4 * Cout) * (4 * cin_pad) * L0 * N,
        transcendentals=0,
        bytes_accessed=4 * (N * Cin * L0 + N * 4 * Cout * L0
                            + 4 * Cout * 4 * cin_pad + 4 * Cout
                            + N * n_tiles * Cin * W + Lt),
    )

    out_flat = pl.pallas_call(
        _fused_up_conv_kernel,
        out_shape=jax.ShapeDtypeStruct((N, 4 * Cout, L0), x.dtype),
        grid=(N, n_tiles),
        in_specs=[
            pl.BlockSpec((4 * Cout, 4 * cin_pad), lambda n, t: (0, 0)),   # weights (resident)
            pl.BlockSpec((4 * Cout, 1), lambda n, t: (0, 0)),             # bias (resident)
            pl.BlockSpec((1, Lt), lambda n, t: (0, 0)),                   # last-column mask (resident)
            pl.BlockSpec((1, Cin, Lt), lambda n, t: (n, 0, t)),           # raw x rows (fused, read once)
            pl.BlockSpec((1, 1, Cin, W), lambda n, t: (n, t, 0, 0)),      # halo row
        ],
        out_specs=pl.BlockSpec((1, 4 * Cout, Lt), lambda n, t: (n, 0, t)),
        scratch_shapes=[pltpu.VMEM((4 * cin_pad, Lt), x.dtype)],
        compiler_params=pltpu.CompilerParams(
            dimension_semantics=("parallel", "parallel"),
            vmem_limit_bytes=int(vmem_limit),
        ),
        cost_estimate=cost,
    )(w_stack, b4, keep, x_flat, halo)

    # Sub-pixel interleave: (N, [a,b,co], [i,j]) -> (N, co, 2i+a, 2j+b).
    # TODO(synk): an f32 lane-parity interleave is a perfect shuffle with no cheap
    # Mosaic primitive, so it stays wrapper-side (~2x extra output HBM traffic); a
    # bf16 output could fuse it in-kernel via pltpu.pack_elementwise for direct NCHW
    # stores, at the cost of reduced output precision.
    y = out_flat.reshape(N, 2, 2, Cout, H, W)
    y = y.transpose(0, 3, 4, 1, 5, 2)                     # (N, Cout, H, 2, W, 2)
    return y.reshape(N, Cout, 2 * H, 2 * W)


def _reference(x, weight, bias):
    # pure-JAX reference: nearest upsample + conv with PyTorch's asymmetric 'same' padding
    x_up = jnp.repeat(jnp.repeat(x, 2, axis=2), 2, axis=3)
    out = jax.lax.conv_general_dilated(
        x_up, weight, window_strides=(1, 1),
        padding=((0, 1), (0, 1)),
        dimension_numbers=("NCHW", "OIHW", "NCHW"))
    return out + bias.reshape(1, -1, 1, 1)


if __name__ == "__main__":
    N, Cin, Cout, H, W = 2, 4, 8, 16, 16
    key = jax.random.PRNGKey(0)
    kx, kw, kb = jax.random.split(key, 3)
    x = jax.random.normal(kx, (N, Cin, H, W), dtype=jnp.float32)
    # deterministic synthetic parameters (shapes of nn.Conv2d(Cin, Cout, kernel_size=2))
    weight = jax.random.normal(kw, (Cout, Cin, 2, 2), dtype=jnp.float32) * 0.1
    bias = jax.random.normal(kb, (Cout,), dtype=jnp.float32) * 0.1

    out = jax.jit(upsampling_forward)(x, weight, bias)
    out = jax.block_until_ready(out)

    ref = _reference(x, weight, bias)
    assert out.shape == (N, Cout, 2 * H, 2 * W), out.shape
    assert jnp.allclose(out, ref, atol=1e-4, rtol=1e-4), float(jnp.max(jnp.abs(out - ref)))
    print("KERNEL_OK")
</pallas_src>

<mosaic_0001>
module attributes {stable_mosaic.version = 11 : i64} {
  func.func @_fused_up_conv_kernel(%arg0: i32, %arg1: i32, %arg2: memref<32x32xf32, #tpu.memory_space<vmem>>, %arg3: memref<32x1xf32, #tpu.memory_space<vmem>>, %arg4: memref<1x256xf32, #tpu.memory_space<vmem>>, %arg5: memref<1x4x256xf32, #tpu.memory_space<vmem>>, %arg6: memref<1x1x4x16xf32, #tpu.memory_space<vmem>>, %arg7: memref<1x32x256xf32, #tpu.memory_space<vmem>>, %arg8: memref<32x256xf32, #tpu.memory_space<vmem>>) attributes {dimension_semantics = [#tpu.dimension_semantics<parallel>, #tpu.dimension_semantics<parallel>], iteration_bounds = array<i64: 2, 1>, scalar_prefetch = 0 : i64, scratch_operands = 1 : i64, tpu.core_type = #tpu.core_type<tc>, window_params = [{pipeline_mode = #tpu.pipeline_mode<synchronous>, transform_indices = @transform_0, window_bounds = array<i64: 32, 32>}, {pipeline_mode = #tpu.pipeline_mode<synchronous>, transform_indices = @transform_1, window_bounds = array<i64: 32, 1>}, {pipeline_mode = #tpu.pipeline_mode<synchronous>, transform_indices = @transform_2, window_bounds = array<i64: 1, 256>}, {transform_indices = @transform_3, window_bounds = array<i64: 1, 4, 256>}, {transform_indices = @transform_4, window_bounds = array<i64: 1, 1, 4, 16>}, {transform_indices = @transform_5, window_bounds = array<i64: 1, 32, 256>}]} {
    %c0 = arith.constant 0 : index
    %c0_0 = arith.constant 0 : index
    %c0_1 = arith.constant 0 : index
    %0 = vector.load %arg5[%c0, %c0_0, %c0_1] : memref<1x4x256xf32, #tpu.memory_space<vmem>>, vector<1x4x256xf32>
    %1 = vector.shape_cast %0 : vector<1x4x256xf32> to vector<4x256xf32>
    %c0_2 = arith.constant 0 : index
    %c0_3 = arith.constant 0 : index
    %2 = vector.load %arg4[%c0_2, %c0_3] : memref<1x256xf32, #tpu.memory_space<vmem>>, vector<1x256xf32>
    %cst = arith.constant 5.000000e-01 : f32
    %3 = vector.broadcast %cst : f32 to vector<1x256xf32>
    %4 = arith.cmpf ogt, %2, %3 : vector<1x256xf32>
    %c0_4 = arith.constant 0 : index
    %c0_5 = arith.constant 0 : index
    %c0_6 = arith.constant 0 : index
    %c0_7 = arith.constant 0 : index
    %5 = vector.load %arg6[%c0_4, %c0_5, %c0_6, %c0_7] : memref<1x1x4x16xf32, #tpu.memory_space<vmem>>, vector<1x1x4x16xf32>
    %6 = vector.shape_cast %5 : vector<1x1x4x16xf32> to vector<4x16xf32>
    %cst_8 = arith.constant 0.000000e+00 : f32
    %7 = vector.broadcast %cst_8 : f32 to vector<4x256xf32>
    %c4 = arith.constant 4 : index
    %c0_9 = arith.constant 0 : index
    %8 = vector.load %arg8[%c4, %c0_9] : memref<32x256xf32, #tpu.memory_space<vmem>>, vector<4x256xf32>
    tpu.vector_store %arg8[%c4, %c0_9], %7 {strides = array<i32>} : memref<32x256xf32, #tpu.memory_space<vmem>>, vector<4x256xf32>,
    %c12 = arith.constant 12 : index
    %c0_10 = arith.constant 0 : index
    %9 = vector.load %arg8[%c12, %c0_10] : memref<32x256xf32, #tpu.memory_space<vmem>>, vector<4x256xf32>
    tpu.vector_store %arg8[%c12, %c0_10], %7 {strides = array<i32>} : memref<32x256xf32, #tpu.memory_space<vmem>>, vector<4x256xf32>,
    %c20 = arith.constant 20 : index
    %c0_11 = arith.constant 0 : index
    %10 = vector.load %arg8[%c20, %c0_11] : memref<32x256xf32, #tpu.memory_space<vmem>>, vector<4x256xf32>
    tpu.vector_store %arg8[%c20, %c0_11], %7 {strides = array<i32>} : memref<32x256xf32, #tpu.memory_space<vmem>>, vector<4x256xf32>,
    %c28 = arith.constant 28 : index
    %c0_12 = arith.constant 0 : index
    %11 = vector.load %arg8[%c28, %c0_12] : memref<32x256xf32, #tpu.memory_space<vmem>>, vector<4x256xf32>
    tpu.vector_store %arg8[%c28, %c0_12], %7 {strides = array<i32>} : memref<32x256xf32, #tpu.memory_space<vmem>>, vector<4x256xf32>,
    %c255_i32 = arith.constant 255 : i32
    %12 = tpu.dynamic_rotate %1 by %c255_i32 dim 1 : vector<4x256xf32>, i32 -> vector<4x256xf32>
    %cst_13 = arith.constant 0.000000e+00 : f32
    %13 = vector.shape_cast %4 : vector<1x256xi1> to vector<1x256xi1>
    %14 = vector.broadcast %13 : vector<1x256xi1> to vector<4x256xi1>
    %15 = vector.broadcast %cst_13 : f32 to vector<4x256xf32>
    %16 = arith.select %14, %12, %15 : vector<4x256xi1>, vector<4x256xf32>
    %c240_i32 = arith.constant 240 : i32
    %17 = tpu.dynamic_rotate %1 by %c240_i32 dim 1 : vector<4x256xf32>, i32 -> vector<4x256xf32>
    %c255_i32_14 = arith.constant 255 : i32
    %18 = tpu.dynamic_rotate %17 by %c255_i32_14 dim 1 : vector<4x256xf32>, i32 -> vector<4x256xf32>
    %cst_15 = arith.constant 0.000000e+00 : f32
    %19 = vector.shape_cast %4 : vector<1x256xi1> to vector<1x256xi1>
    %20 = vector.broadcast %19 : vector<1x256xi1> to vector<4x256xi1>
    %21 = vector.broadcast %cst_15 : f32 to vector<4x256xf32>
    %22 = arith.select %20, %18, %21 : vector<4x256xi1>, vector<4x256xf32>
    %c0_16 = arith.constant 0 : index
    %c0_17 = arith.constant 0 : index
    %23 = vector.load %arg8[%c0_16, %c0_17] : memref<32x256xf32, #tpu.memory_space<vmem>>, vector<4x256xf32>
    tpu.vector_store %arg8[%c0_16, %c0_17], %1 {strides = array<i32>} : memref<32x256xf32, #tpu.memory_space<vmem>>, vector<4x256xf32>,
    %c8 = arith.constant 8 : index
    %c0_18 = arith.constant 0 : index
    %24 = vector.load %arg8[%c8, %c0_18] : memref<32x256xf32, #tpu.memory_space<vmem>>, vector<4x256xf32>
    tpu.vector_store %arg8[%c8, %c0_18], %16 {strides = array<i32>} : memref<32x256xf32, #tpu.memory_space<vmem>>, vector<4x256xf32>,
    %c16 = arith.constant 16 : index
    %c0_19 = arith.constant 0 : index
    %25 = vector.load %arg8[%c16, %c0_19] : memref<32x256xf32, #tpu.memory_space<vmem>>, vector<4x256xf32>
    tpu.vector_store %arg8[%c16, %c0_19], %17 {strides = array<i32>} : memref<32x256xf32, #tpu.memory_space<vmem>>, vector<4x256xf32>,
    %c16_20 = arith.constant 16 : index
    %c240 = arith.constant 240 : index
    %26 = vector.load %arg8[%c16_20, %c240] : memref<32x256xf32, #tpu.memory_space<vmem>>, vector<4x16xf32>
    tpu.vector_store %arg8[%c16_20, %c240], %6 {strides = array<i32>} : memref<32x256xf32, #tpu.memory_space<vmem>>, vector<4x16xf32>,
    %c24 = arith.constant 24 : index
    %c0_21 = arith.constant 0 : index
    %27 = vector.load %arg8[%c24, %c0_21] : memref<32x256xf32, #tpu.memory_space<vmem>>, vector<4x256xf32>
    tpu.vector_store %arg8[%c24, %c0_21], %22 {strides = array<i32>} : memref<32x256xf32, #tpu.memory_space<vmem>>, vector<4x256xf32>,
    %28 = vector.extract_strided_slice %6 {offsets = [0, 1], sizes = [4, 15], strides = [1, 1]} : vector<4x16xf32> to vector<4x15xf32>
    %c24_22 = arith.constant 24 : index
    %c240_23 = arith.constant 240 : index
    %29 = vector.load %arg8[%c24_22, %c240_23] : memref<32x256xf32, #tpu.memory_space<vmem>>, vector<4x15xf32>
    tpu.vector_store %arg8[%c24_22, %c240_23], %28 {strides = array<i32>} : memref<32x256xf32, #tpu.memory_space<vmem>>, vector<4x15xf32>,
    %c0_24 = arith.constant 0 : index
    %c0_25 = arith.constant 0 : index
    %30 = vector.load %arg2[%c0_24, %c0_25] : memref<32x32xf32, #tpu.memory_space<vmem>>, vector<32x32xf32>
    %c0_26 = arith.constant 0 : index
    %c0_27 = arith.constant 0 : index
    %31 = vector.load %arg8[%c0_26, %c0_27] : memref<32x256xf32, #tpu.memory_space<vmem>>, vector<32x256xf32>
    %cst_28 = arith.constant dense<0.000000e+00> : vector<32x256xf32>
    %32 = tpu.matmul %30, %31, %cst_28 {dimension_numbers = #tpu.dot_dimension_numbers<[1], [0], [0], [1], [0, 0, 1, 1], [], []>} : vector<32x32xf32>, vector<32x256xf32>, vector<32x256xf32> -> vector<32x256xf32>
    %c0_29 = arith.constant 0 : index
    %c0_30 = arith.constant 0 : index
    %33 = vector.load %arg3[%c0_29, %c0_30] : memref<32x1xf32, #tpu.memory_space<vmem>>, vector<32x1xf32>
    %34 = vector.broadcast %33 : vector<32x1xf32> to vector<32x256xf32>
    %35 = arith.addf %32, %34 : vector<32x256xf32>
    %c0_31 = arith.constant 0 : index
    %c0_32 = arith.constant 0 : index
    %c0_33 = arith.constant 0 : index
    %36 = vector.load %arg7[%c0_31, %c0_32, %c0_33] : memref<1x32x256xf32, #tpu.memory_space<vmem>>, vector<1x32x256xf32>
    %37 = vector.shape_cast %36 : vector<1x32x256xf32> to vector<32x256xf32>
    %38 = vector.shape_cast %35 : vector<32x256xf32> to vector<1x32x256xf32>
    tpu.vector_store %arg7[%c0_31, %c0_32, %c0_33], %38 {strides = array<i32>} : memref<1x32x256xf32, #tpu.memory_space<vmem>>, vector<1x32x256xf32>,
    return
  }
  func.func @transform_0(%arg0: i32, %arg1: i32) -> (i32, i32) {
    %c0_i32 = arith.constant 0 : i32
    %c0_i32_0 = arith.constant 0 : i32
    %c0_i32_1 = arith.constant 0 : i32
    return %c0_i32, %c0_i32_0 : i32, i32
  }
  func.func @transform_1(%arg0: i32, %arg1: i32) -> (i32, i32) {
    %c0_i32 = arith.constant 0 : i32
    %c0_i32_0 = arith.constant 0 : i32
    %c0_i32_1 = arith.constant 0 : i32
    return %c0_i32, %c0_i32_0 : i32, i32
  }
  func.func @transform_2(%arg0: i32, %arg1: i32) -> (i32, i32) {
    %c0_i32 = arith.constant 0 : i32
    %c0_i32_0 = arith.constant 0 : i32
    %c0_i32_1 = arith.constant 0 : i32
    return %c0_i32, %c0_i32_0 : i32, i32
  }
  func.func @transform_3(%arg0: i32, %arg1: i32) -> (i32, i32, i32) {
    %c0_i32 = arith.constant 0 : i32
    %c0_i32_0 = arith.constant 0 : i32
    return %arg0, %c0_i32, %arg1 : i32, i32, i32
  }
  func.func @transform_4(%arg0: i32, %arg1: i32) -> (i32, i32, i32, i32) {
    %c0_i32 = arith.constant 0 : i32
    %c0_i32_0 = arith.constant 0 : i32
    %c0_i32_1 = arith.constant 0 : i32
    return %arg0, %arg1, %c0_i32, %c0_i32_0 : i32, i32, i32, i32
  }
  func.func @transform_5(%arg0: i32, %arg1: i32) -> (i32, i32, i32) {
    %c0_i32 = arith.constant 0 : i32
    %c0_i32_0 = arith.constant 0 : i32
    return %arg0, %c0_i32, %arg1 : i32, i32, i32
  }
}

</mosaic_0001>

<bundles_post_ra>
// kernel: tile.8
= control target key start
LH: loop header
LB: loop body
LE: loop exit
PB: predicated region body
PF: predicated region fallthrough
CT: control target
= control target key end

     0   :  { %s22_s0 = inlined_call_operand.vmem [shape: f32[8], index: 0, kind: input, shape index: {}]   ;;  %s23_s1 = inlined_call_operand.vmem [shape: f32[4,8], index: 1, kind: output, shape index: {}]  }
   0x1   :  { %v4_v0 = vld [vmem:[%s22_s0] ss:$0 sm:$0xff] }
   0x2   :  { %5 = vst [vmem:[%s23_s1] sm:$0xf] %v4_v0 }

// kernel: tile.0
= control target key start
LH: loop header
LB: loop body
LE: loop exit
PB: predicated region body
PF: predicated region fallthrough
CT: control target
= control target key end

     0   :  { %s66_s8 = smov 125   ;;  %vm7_vm0 = vcmask 7168   ;;  %s67_s11 = smov 126   ;;  %s117_s0 = inlined_call_operand.vmem [shape: f32[4,8], index: 0, kind: input, shape index: {}]   ;;  %s118_s1 = inlined_call_operand.vmem [shape: f32[32,1], index: 1, kind: output, shape index: {}]  }
   0x1   :  { %v4_v0 = vld [vmem:[%s117_s0] sm:$0xf]  ;;  %s65_s0 = smov 127   ;;  %s68_s12 = smov 124  }
   0x2   :  { %5 = vst [vmem:[#allocation0] sm:$0xf] %v4_v0  ;;  %s69_s13 = smov 123   ;;  %s70_s14 = smov 122  }
   0x3   :  { %s71_s15 = smov 121  }
   0x9   :  { %v9_v1 = vld [vmem:[#allocation0] sm:$0xf]  }
   0xa   :  { %v21_v2 = vld [vmem:[#allocation0] sm:$0xf]   ;;  %10 = vrot.lane.b32.xlu0 %v9_v1, %s65_s0 }
   0xb   :  { %22 = vrot.lane.b32.xlu1 %v21_v2, %s66_s8  ;;  %v15_v3 = vld [vmem:[#allocation0] sm:$0xf]  }
   0xc   :  { %v27_v4 = vld [vmem:[#allocation0] sm:$0xf]  }
   0xd   :  { %v6_v5 = vld [vmem:[#allocation0] sm:$0xf]  }
   0xe   :  { %8 = vst.msk [vmem:[%s118_s1] ss:$8 sm:$0xf] %vm7_vm0, %v6_v5   ;;  %16 = vrot.lane.b32.xlu0 %v15_v3, %s67_s11  ;;  %v33_v6 = vld [vmem:[#allocation0] sm:$0xf]  }
   0xf   :  { %28 = vrot.lane.b32.xlu1 %v27_v4, %s68_s12  ;;  %v39_v7 = vld [vmem:[#allocation0] sm:$0xf]  }
  0x10   :  { %v45_v8 = vld [vmem:[#allocation0] sm:$0xf]  }
  0x12   :  { %34 = vrot.lane.b32.xlu0 %v33_v6, %s69_s13 }
  0x13   :  { %40 = vrot.lane.b32.xlu1 %v39_v7, %s70_s14 }
  0x16   :  { %46 = vrot.lane.b32.xlu0 %v45_v8, %s71_s15 }
  0x7c   :  { %v11_v9 = vpop.permute.xlu0 %10  }
  0x7d   :  { %v23_v10 = vpop.permute.xlu1 %22   ;;  %51 = vst.msk [vmem:[%s118_s1 + $0x1] ss:$8 sm:$0xf] %vm7_vm0, %v11_v9  }
  0x7e   :  { %53 = vst.msk [vmem:[%s118_s1 + $0x3] ss:$8 sm:$0xf] %vm7_vm0, %v23_v10  }
  0x80   :  { %v17_v11 = vpop.permute.xlu0 %16  }
  0x81   :  { %v29_v12 = vpop.permute.xlu1 %28   ;;  %52 = vst.msk [vmem:[%s118_s1 + $0x2] ss:$8 sm:$0xf] %vm7_vm0, %v17_v11  }
  0x82   :  { %54 = vst.msk [vmem:[%s118_s1 + $0x4] ss:$8 sm:$0xf] %vm7_vm0, %v29_v12  }
  0x84   :  { %v35_v13 = vpop.permute.xlu0 %34  }
  0x85   :  { %v41_v14 = vpop.permute.xlu1 %40   ;;  %55 = vst.msk [vmem:[%s118_s1 + $0x5] ss:$8 sm:$0xf] %vm7_vm0, %v35_v13  }
  0x86   :  { %56 = vst.msk [vmem:[%s118_s1 + $0x6] ss:$8 sm:$0xf] %vm7_vm0, %v41_v14  }
  0x88   :  { %v47_v15 = vpop.permute.xlu0 %46  }
  0x89   :  { %57 = vst.msk [vmem:[%s118_s1 + $0x7] ss:$8 sm:$0xf] %vm7_vm0, %v47_v15  }

// kernel: upsampling_forward.1
= control target key start
LH: loop header
LB: loop body
LE: loop exit
PB: predicated region body
PF: predicated region fallthrough
CT: control target
= control target key end

     0   :  { %s732_s18 = smov 0   ;;  %s734_s19 = smov 0   ;;  %s827_s0 = inlined_call_operand.vmem [shape: f32[32,32], index: 0, kind: input, shape index: {}]   ;;  %s828_s1 = inlined_call_operand.vmem [shape: f32[32,1], index: 1, kind: input, shape index: {}]   ;;  %s829_s2 = inlined_call_operand.vmem [shape: f32[1,256], index: 2, kind: input, shape index: {}]   ;;  %s830_s3 = inlined_call_operand.vmem [shape: f32[2,4,256], index: 3, kind: input, shape index: {}]   ;;  %s831_s4 = inlined_call_operand.vmem [shape: f32[2,1,4,16], index: 4, kind: input, shape index: {}]   ;;  %s832_s5 = inlined_call_operand.vmem [shape: f32[2,32,256], index: 5, kind: output, shape index: {}]  }
   0x1   :  { %s736_s20 = smov 0  }
   0x2 LB: > { %s27_s21 = sadd.s32 1, %s691_s19  ;;  %p615_p0 = scmp.ge.s32.totalorder %s695_s20, 1  ;;  %s695_s20 = sphi %s736_s20, %s15_s20   ;;  %s691_s19 = sphi %s734_s19, %s834_s19   ;;  %s687_s18 = sphi %s732_s18, %s833_s18  }
   0x3   : > { %p29_p1 = scmp.ge.s32.totalorder %s27_s21, 2  ;;  %p222_p2 = scmp.lt.s32.totalorder %s695_s20, 3 }
   0x5   : > { %s836_s21 = smov (%p29_p1, %s27_s21), 0  ;;  %p223_p3 = pnand %p615_p0, %p222_p2 }
   0x6   : > { %p266_p4 = scmp.lt.s32.totalorder (!%p223_p3), %s687_s18, 1  ;;  %v697_v0 = vmov (!%p223_p3), 0.0   ;;  %v698_v1 = vmov (!%p223_p3), 0   ;;  %s699_s26 = smov (!%p223_p3), 112   ;;  %v311_v4 = vlaneseq (!%p223_p3)  ;;  %v293_v5 = vld [vmem:[%s829_s2] sm:$0x3] (!%p223_p3) }
   0x7   : > { %226 = sbr.rel (%p223_p3) target bundleno = 492 (0x1ec), region = 40  ;;  %297 = vst [vmem:[#allocation2 + $0x8] sm:$0xf0] (!%p223_p3), %v697_v0  ;;  %299 = vst [vmem:[#allocation2 + $0x18] sm:$0xf0] (!%p223_p3), %v697_v0  ;;  %476 = vmatprep.mubr.f32.mxu0 (!%p223_p3), %v697_v0  ;;  %488 = vmatprep.mubr.f32.mxu1 (!%p223_p3), %v697_v0  ;;  %s700_s27 = smov (!%p223_p3), 127  }
   0x8   : > { %296 = vst [vmem:[#allocation2] sm:$0xf0] (!%p223_p3), %v697_v0  ;;  %298 = vst [vmem:[#allocation2 + $0x10] sm:$0xf0] (!%p223_p3), %v697_v0  ;;  %671 = vset.pattern.permute.xlu1 (!%p223_p3), %v698_v1  ;;  %670 = vset.pattern.permute.xlu0 (!%p223_p3), %v698_v1  ;;  %v318_v6 = vshrl.u32 (!%p223_p3), %v311_v4, 7  ;;  %vm294_vm0 = vcmp.gt.f32.partialorder (!%p223_p3), %v293_v5, 0.5 }
   0x9   : > { %300 = vst [vmem:[#allocation2 + $0x20] sm:$0xf0] (!%p223_p3), %v697_v0  ;;  %301 = vst [vmem:[#allocation2 + $0x28] sm:$0xf0] (!%p223_p3), %v697_v0  ;;  %v316_v9 = vsel (!%p223_p3), %vm294_vm0, 1, %v698_v1  ;;  %v312_v10 = vand.u32 (!%p223_p3), 127, %v311_v4 }
   0xa   : > { %302 = vst [vmem:[#allocation2 + $0x30] sm:$0xf0] (!%p223_p3), %v697_v0  ;;  %303 = vst [vmem:[#allocation2 + $0x38] sm:$0xf0] (!%p223_p3), %v697_v0  ;;  %v319_v7 = vsub.s32 (!%p223_p3), 0, %v318_v6  ;;  %v323_v8 = vsub.s32 (!%p223_p3), 1, %v318_v6 }
   0xb   : > { %vm333_vm1 = vcmp.lt.s32.totalorder (!%p223_p3), %v312_v10, 112  ;;  %vm313_vm2 = vcmp.lt.s32.totalorder (!%p223_p3), %v312_v10, 127  ;;  %s701_s9 = smov (!%p223_p3), 111   ;;  %v376_v30 = vld [vmem:[%s828_s1 + $0x8] sm:$0xff] (!%p223_p3)  ;;  %v375_v31 = vld [vmem:[%s828_s1] sm:$0xff] (!%p223_p3)  ;;  %v377_v32 = vld [vmem:[%s828_s1 + $0x10] sm:$0xff] (!%p223_p3) }
   0xc   : > { %v320_v11 = vrot.slane (!%p223_p3), %v316_v9, %v319_v7  ;;  %v324_v12 = vrot.slane (!%p223_p3), %v316_v9, %v323_v8  ;;  %v378_v33 = vld [vmem:[%s828_s1 + $0x18] sm:$0xff] (!%p223_p3)  ;;  %vm361_vm5 = vcmask (!%p223_p3), 1036160   ;;  %vm354_vm6 = vcmask (!%p223_p3), 1044352   ;;  %v363_v48 = vld [vmem:[%s827_s0] sm:$0xff] (!%p223_p3)  ;;  %v365_v49 = vld [vmem:[%s827_s0 + $0x10] sm:$0xff] (!%p223_p3) }
   0xd   : > { %vm399_vm7 = vcmask (!%p223_p3), 261120   ;;  %v364_v50 = vld [vmem:[%s827_s0 + $0x8] sm:$0xff] (!%p223_p3)  ;;  %v366_v51 = vld [vmem:[%s827_s0 + $0x18] sm:$0xff] (!%p223_p3) }
   0xe   : > { %s838_s18 = smov (!%p266_p4, %s687_s18), 1  ;;  %vm325_vm3 = vcmp.eq.s32.totalorder %v320_v11, 1  ;;  %vm326_vm4 = vcmp.eq.s32.totalorder %v324_v12, 1 }
   0xf   : > { %s627_s22 = sshll.u32 %s838_s18, 3  ;;  %s618_s30 = sshll.u32 %s838_s18, 2 }
  0x10   : > { %s273_s25 = scalar_lea.vmem %s830_s3, %s627_s22  ;;  %s281_s8 = scalar_lea.vmem %s831_s4, %s618_s30 }
  0x11   : > { %v292_v2 = vld [vmem:[%s273_s25] sm:$0xff]  ;;  %s628_s30 = sshll.u32 %s838_s18, 6 }
  0x12   : > { %329 = vrot.lane.b32.xlu0 %v292_v2, %s699_s26  ;;  %344 = vst [vmem:[#allocation2] sm:$0xf] %v292_v2  ;;  %v305_v3 = vcombine.high %v292_v2, %v292_v2  ;;  %307 = vrot.lane.b32.xlu1 %v292_v2, %s700_s27  ;;  %v295_v23 = vld [vmem:[%s281_s8] sm:$0xf]  ;;  %s290_s8 = scalar_lea.vmem %s832_s5, %s628_s30 }
  0x14   : > { %345 = vst [vmem:[#allocation2 + $0x8] sm:$0xf] %v305_v3 }
  0x16   : > { %331 = vrot.lane.b32.xlu0 %v305_v3, %s699_s26  ;;  %309 = vrot.lane.b32.xlu1 %v305_v3, %s700_s27 }
  0x19   : > { %v367_v25 = vld [vmem:[#allocation2] sm:$0xff] }
  0x1b   : > { %v368_v24 = vld [vmem:[#allocation2 + $0x8] sm:$0xff] }
  0x84   : > { %v330_v13 = vpop.permute.xlu0 %329  ;;  %v308_v14 = vpop.permute.xlu1 %307 }
  0x88   : > { %v332_v15 = vpop.permute.xlu0 %331  ;;  %v310_v16 = vpop.permute.xlu1 %309 }
  0x89   : > { %v335_v17 = vsel %vm333_vm1, %v332_v15, %v330_v13  ;;  %v334_v18 = vsel %vm333_vm1, %v330_v13, %v332_v15  ;;  %v314_v19 = vsel %vm313_vm2, %v308_v14, %v310_v16  ;;  %v315_v20 = vsel %vm313_vm2, %v310_v16, %v308_v14 }
  0x8a   : > { %338 = vrot.lane.b32.xlu1 %v335_v17, %s700_s27  ;;  %349 = vst [vmem:[#allocation2 + $0x28] sm:$0xf] %v335_v17  ;;  %336 = vrot.lane.b32.xlu0 %v334_v18, %s700_s27  ;;  %348 = vst [vmem:[#allocation2 + $0x20] sm:$0xf] %v334_v18  ;;  %v327_v21 = vsel %vm325_vm3, %v314_v19, 0.0  ;;  %v328_v22 = vsel %vm326_vm4, %v315_v20, 0.0 }
  0x8b   : > { %346 = vst [vmem:[#allocation2 + $0x10] sm:$0xf] %v327_v21  ;;  %347 = vst [vmem:[#allocation2 + $0x18] sm:$0xf] %v328_v22 }
  0x8e   : > { %358 = vrot.lane.b32.xlu1 %v295_v23, %s701_s9  ;;  %351 = vrot.lane.b32.xlu0 %v295_v23, %s699_s26 }
  0x91   : > { %v371_v46 = vld [vmem:[#allocation2 + $0x20] sm:$0xff] }
  0x92   : > { %v370_v26 = vld [vmem:[#allocation2 + $0x18] sm:$0xff]  ;;  %v369_v27 = vld [vmem:[#allocation2 + $0x10] sm:$0xff]  ;;  %386 = vperm.xlu1 %671, %v376_v30   ;;  %381 = vperm.xlu0 %670, %v375_v31  }
  0x93   : > { %v629_v28 = vpack.c.bf16 %v370_v26, %v368_v24  ;;  %v631_v29 = vpack.c.bf16 %v369_v27, %v367_v25 }
  0x95   : > { %630 = vmatprep.subr.bf16.mxu0 %v629_v28  ;;  %637 = vmatprep.subr.bf16.mxu1 %v629_v28 }
  0x96   : > { %632 = vmatpush1.bf16.msra.mxu0 %v631_v29  ;;  %639 = vmatpush1.bf16.msra.mxu1 %v631_v29 }
  0x97   : > { %391 = vperm.xlu1 %671, %v377_v32   ;;  %396 = vperm.xlu0 %670, %v378_v33  }
  0xfc   : > { %v339_v34 = vpop.permute.xlu1 %338  ;;  %v337_v35 = vpop.permute.xlu0 %336 }
  0xfd   : > { %v340_v36 = vsel %vm313_vm2, %v337_v35, %v339_v34  ;;  %v341_v37 = vsel %vm313_vm2, %v339_v34, %v337_v35 }
  0xfe   : > { %v342_v38 = vsel %vm325_vm3, %v340_v36, 0.0  ;;  %v343_v39 = vsel %vm326_vm4, %v341_v37, 0.0 }
  0xff   : > { %356 = vst [vmem:[#allocation2 + $0x30] sm:$0xf] %v342_v38  ;;  %357 = vst [vmem:[#allocation2 + $0x38] sm:$0xf] %v343_v39 }
 0x100   : > { %v359_v40 = vpop.permute.xlu1 %358  ;;  %v352_v41 = vpop.permute.xlu0 %351 }
 0x101   : > { %362 = vst.msk [vmem:[#allocation2 + $0x38] sm:$0xf] %vm361_vm5, %v359_v40 }
 0x102   : > { %355 = vst.msk [vmem:[#allocation2 + $0x28] sm:$0xf] %vm354_vm6, %v352_v41 }
 0x106   : > { %v373_v42 = vld [vmem:[#allocation2 + $0x30] sm:$0xff] }
 0x107   : > { %v635_v47 = vpack.c.bf16 %v373_v42, %v371_v46 }
 0x108   : > { %v374_v44 = vld [vmem:[#allocation2 + $0x38] sm:$0xff] }
 0x109   : > { %v372_v43 = vld [vmem:[#allocation2 + $0x28] sm:$0xff] }
 0x10a   : > { %v633_v45 = vpack.c.bf16 %v374_v44, %v372_v43 }
 0x10c   : > { %634 = vmatprep.subr.bf16.mxu0 %v633_v45  ;;  %638 = vmatprep.subr.bf16.mxu1 %v633_v45 }
 0x10d   : > { %636 = vmatpush1.bf16.msra.mxu0 %v635_v47  ;;  %640 = vmatpush1.bf16.msra.mxu1 %v635_v47 }
 0x110   : > { %621 = vmatmul.mubr.msk.f32.vlgmr.msra.gmra.mrb[0].mxu0 %vm399_vm7, %v363_v48  ;;  %623 = vmatmul.mubr.msk.f32.vlgmr.msra.gmra.mrb[0].mxu1 %vm399_vm7, %v365_v49 }
 0x111   : > { %482 = vmatprep.mubr.f32.mxu0 %v697_v0  ;;  %494 = vmatprep.mubr.f32.mxu1 %v697_v0  ;;  %v387_v52 = vpop.permute.xlu1 %386  ;;  %v382_v53 = vpop.permute.xlu0 %381 }
 0x114   : > { %622 = vmatmul.mubr.msk.f32.gmra.mrb[2].mxu0 %vm399_vm7, %v364_v50  ;;  %624 = vmatmul.mubr.msk.f32.gmra.mrb[2].mxu1 %vm399_vm7, %v366_v51 }
 0x116   : > { %v392_v54 = vpop.permute.xlu1 %391  ;;  %v397_v63 = vpop.permute.xlu0 %396 }
 0x1e3   : > { %v478_v55 = vpop.f32.mrb[0].mxu0  ;;  %v490_v56 = vpop.f32.mrb[0].mxu1 }
 0x1e4   : > { %v479_v57 = vadd.f32 %v478_v55, %v382_v53  ;;  %v491_v58 = vadd.f32 %v490_v56, %v392_v54  ;;  %v480_v59 = vpop.f32.mrb[1].mxu0  ;;  %v492_v60 = vpop.f32.mrb[1].mxu1 }
 0x1e5   : > { %v481_v61 = vadd.f32 %v480_v59, %v382_v53  ;;  %v493_v62 = vadd.f32 %v492_v60, %v392_v54 }
 0x1e6   : > { %501 = vst [vmem:[%s290_s8] sm:$0xff] %v479_v57  ;;  %505 = vst [vmem:[%s290_s8 + $0x20] sm:$0xff] %v491_v58 }
 0x1e7   : > { %502 = vst [vmem:[%s290_s8 + $0x8] sm:$0xff] %v481_v61  ;;  %506 = vst [vmem:[%s290_s8 + $0x28] sm:$0xff] %v493_v62  ;;  %v484_v0 = vpop.f32.mrb[2].mxu0  ;;  %v496_v1 = vpop.f32.mrb[2].mxu1 }
 0x1e8   : > { %v485_v2 = vadd.f32 %v484_v0, %v387_v52  ;;  %v497_v3 = vadd.f32 %v496_v1, %v397_v63  ;;  %v486_v4 = vpop.f32.mrb[3].mxu0  ;;  %v498_v5 = vpop.f32.mrb[3].mxu1 }
 0x1e9   : > { %v487_v6 = vadd.f32 %v486_v4, %v387_v52  ;;  %v499_v7 = vadd.f32 %v498_v5, %v397_v63 }
 0x1ea   : > { %503 = vst [vmem:[%s290_s8 + $0x10] sm:$0xff] %v485_v2  ;;  %507 = vst [vmem:[%s290_s8 + $0x30] sm:$0xff] %v497_v3 }
 0x1eb   : > { %504 = vst [vmem:[%s290_s8 + $0x18] sm:$0xff] %v487_v6  ;;  %508 = vst [vmem:[%s290_s8 + $0x38] sm:$0xff] %v499_v7 }
 0x1ec PF: > { %s15_s20 = sadd.s32 1, %s695_s20   ;;  %s833_s18 = smov %s691_s19 }
 0x1ed   : > { %p12_p5 = scmp.ge.s32.totalorder %s15_s20, 4   ;;  %s834_s19 = smov %s836_s21 }
 0x1ef   :  { %14 = sbr.rel (!%p12_p5) target bundleno = 2 (0x2), region = 73 }

</bundles_post_ra>
